<compile_context>
chip_gen: v7x
topology: tpu7x:2x2x1
jax: 0.10.0
libtpu: 0.0.40
codegen_flags: <defaults>
</compile_context>

<pallas_src>
import functools

import jax
import jax.numpy as jnp
from jax.experimental import pallas as pl
from jax.experimental.pallas import tpu as pltpu


def _round_up(v, m):
    return -(-v // m) * m


def _adapter_kernel(x_ref, wd_ref, bd_ref, wu_ref, bu_ref, *rest, eps, use_savg):
    """Fused adapter forward for one tile of (possibly token-packed) rows.

    x_ref:  (TM, DL)  input rows (also the residual), DL = P*d_model
    wd_ref: (DL, RL)  down projection with LN affine folded in (block-diag if packed)
    bd_ref: (1, RL)   folded down bias (f32)
    wu_ref: (RL, DL)  up projection with adapter scale folded in
    bu_ref: (1, DL)   scaled up bias (f32)
    savg   (optional) (DL, DL) block-diagonal 1/d_model matrix: segmented
                      LayerNorm mean/var reduction done on the MXU.
    o_ref:  (TM, DL)  output rows
    """
    if use_savg:
        savg_ref, o_ref = rest
    else:
        (o_ref,) = rest
        savg_ref = None

    x = x_ref[...].astype(jnp.float32)          # residual kept in f32

    # --- LayerNorm ('in'); gamma/beta already folded into wd/bd host-side ---
    if use_savg:
        savg = savg_ref[...]
        mean = jnp.dot(x, savg, preferred_element_type=jnp.float32)
        xc = x - mean
        var = jnp.dot(xc * xc, savg, preferred_element_type=jnp.float32)
    else:
        mean = jnp.mean(x, axis=-1, keepdims=True)
        xc = x - mean
        var = jnp.mean(xc * xc, axis=-1, keepdims=True)
    xn = xc * jax.lax.rsqrt(var + eps)

    # --- down_proj (+ folded LN affine) + ReLU, f32 accumulation ---
    h = jnp.dot(xn.astype(wd_ref.dtype), wd_ref[...],
                preferred_element_type=jnp.float32) + bd_ref[...]
    h = jnp.maximum(h, 0.0)
    # dropout p=0.0 (eval mode) -> identity.

    # --- up_proj (scale pre-folded) + residual ---
    up = jnp.dot(h.astype(wu_ref.dtype), wu_ref[...],
                 preferred_element_type=jnp.float32) + bu_ref[...]
    o_ref[...] = (up + x).astype(o_ref.dtype)


def adapter_forward(x, gamma, beta, wd, bd, wu, bu, *, scale, eps=1e-5, tm=1024):
    """x: (B, N, D). Returns (B, N, D). Adapter with layernorm_option='in'."""
    B, N, D = x.shape
    R = wd.shape[1]
    rows = B * N
    x_dt = x.dtype
    f32 = jnp.float32

    # --- host-side weight folding (works for traced / learnable `scale`) ---
    gamma_f = gamma.reshape(1, D).astype(f32)
    beta_f = beta.reshape(1, D).astype(f32)
    wd_f = wd.astype(f32)
    wu_f = wu.astype(f32)
    # (xn*g + b) @ Wd + bd  ==  xn @ (g[:,None]*Wd) + (b @ Wd + bd)
    wd_fold = (gamma_f.reshape(D, 1) * wd_f).astype(wd.dtype)
    bd_fold = bd.reshape(1, R).astype(f32) + beta_f @ wd_f
    # (h @ Wu + bu) * s  ==  h @ (Wu*s) + bu*s
    wu_fold = (wu_f * scale).astype(wu.dtype)
    bu_fold = bu.reshape(1, D).astype(f32) * scale

    # --- lane packing: put P tokens per 128-lane row when D < 128 ---
    if D < 128 and 128 % D == 0:
        P = 128 // D
    else:
        P = 1
        # TODO(synk): D < 128 that does not divide 128 (e.g. 96) falls back to
        # the direct (lane-sparse) path; zero-padding the feature dim to 128
        # would keep stores lane-dense.
    DL, RL = P * D, P * R

    # Segmented/MXU LayerNorm reduce: required when packed, and cheap enough
    # (<= 1 MiB constant) to also use on the direct path for small DL.
    use_savg = (P > 1) or (DL <= 512)

    if P > 1:
        wd_k = jnp.kron(jnp.eye(P, dtype=wd_fold.dtype), wd_fold)   # (DL, RL)
        wu_k = jnp.kron(jnp.eye(P, dtype=wu_fold.dtype), wu_fold)   # (RL, DL)
        bd_k = jnp.tile(bd_fold, (1, P))
        bu_k = jnp.tile(bu_fold, (1, P))
    else:
        wd_k, wu_k, bd_k, bu_k = wd_fold, wu_fold, bd_fold, bu_fold
    savg = None
    if use_savg:
        savg = jnp.kron(jnp.eye(P, dtype=f32),
                        jnp.full((D, D), 1.0 / D, dtype=f32))        # (DL, DL)

    # --- row packing; zero-pad only the ragged tail of a packed row ---
    x2 = x.reshape(rows, D)
    rows_p = rows
    if P > 1 and rows % P:
        rows_p = _round_up(rows, P)
        x2 = jnp.concatenate(
            [x2, jnp.zeros((rows_p - rows, D), x2.dtype)], axis=0)
    prow = rows_p // P
    xp = x2.reshape(prow, DL)

    # --- tile sizing: VMEM budget, dtype-aware sublane alignment, balance ---
    itemsize = jnp.dtype(x_dt).itemsize
    align = {4: 8, 2: 16, 1: 32}.get(itemsize, 8)
    wbytes = jnp.dtype(wd_k.dtype).itemsize
    const_bytes = 2 * (2 * DL * RL * wbytes + (RL + DL) * 4)   # double-buffered consts
    if use_savg:
        const_bytes += 2 * DL * DL * 4
    budget = 26 * 1024 * 1024
    # 2x-buffered x tile + 2x-buffered out tile + ~6 f32 DL temps + 2 f32 RL temps
    per_row = 4 * DL * itemsize + 6 * DL * 4 + 2 * RL * 4
    avail = max(budget - const_bytes, per_row * align)
    tm_cap = max(align, (avail // per_row) // align * align)

    tm_eff = max(align, min(_round_up(tm, align), tm_cap))
    # Enough grid steps (>= min(4, prow // align)) so both v7x TCs get work.
    target_steps = min(4, prow // align)
    if target_steps >= 2 and -(-prow // tm_eff) < target_steps:
        tm_eff = _round_up(-(-prow // target_steps), align)
    # Never let the first block overrun the row extent.
    if tm_eff > prow:
        tm_eff = prow if prow < align else (prow // align) * align
    grid = -(-prow // tm_eff)   # partial last block handled by Pallas

    kern = functools.partial(_adapter_kernel, eps=float(eps), use_savg=use_savg)

    in_specs = [
        pl.BlockSpec((tm_eff, DL), lambda i: (i, 0)),   # x tile / residual
        pl.BlockSpec((DL, RL), lambda i: (0, 0)),       # folded down weight
        pl.BlockSpec((1, RL), lambda i: (0, 0)),        # folded down bias
        pl.BlockSpec((RL, DL), lambda i: (0, 0)),       # scaled up weight
        pl.BlockSpec((1, DL), lambda i: (0, 0)),        # scaled up bias
    ]
    args = [xp, wd_k, bd_k, wu_k, bu_k]
    if use_savg:
        in_specs.append(pl.BlockSpec((DL, DL), lambda i: (0, 0)))   # seg-avg mat
        args.append(savg)

    out = pl.pallas_call(
        kern,
        out_shape=jax.ShapeDtypeStruct((prow, DL), x_dt),
        grid_spec=pltpu.PrefetchScalarGridSpec(
            num_scalar_prefetch=0,
            grid=(grid,),
            in_specs=in_specs,
            out_specs=pl.BlockSpec((tm_eff, DL), lambda i: (i, 0)),
        ),
        compiler_params=pltpu.CompilerParams(
            dimension_semantics=("parallel",),          # shard tiles across v7x TCs
            vmem_limit_bytes=48 * 1024 * 1024,
        ),
    )(*args)

    out = out.reshape(rows_p, D)
    if rows_p != rows:
        out = out[:rows]
    return out.reshape(B, N, D)


def reference_adapter(x, gamma, beta, wd, bd, wu, bu, *, scale, eps=1e-5):
    """Plain-JAX reference mirroring the PyTorch forward (eval mode)."""
    xf = x.astype(jnp.float32)
    mean = jnp.mean(xf, axis=-1, keepdims=True)
    var = jnp.mean((xf - mean) ** 2, axis=-1, keepdims=True)
    xln = (xf - mean) * jax.lax.rsqrt(var + eps) * gamma.reshape(1, -1) + beta.reshape(1, -1)
    down = jnp.maximum(xln @ wd.astype(jnp.float32) + bd.reshape(1, -1), 0.0)
    up = down @ wu.astype(jnp.float32) + bu.reshape(1, -1)
    return (up * scale + xf).astype(x.dtype)


if __name__ == "__main__":
    # Module config: init_option='lora', adapter_scalar='0.1' (fixed float),
    # adapter_layernorm_option='in', dropout=0.0 (eval -> no-op).
    def run_case(d_model, down_size, B, N, key, dtype=jnp.float32,
                 atol=2e-4, rtol=2e-4):
        kx, kwd, kwu, kbd, kbu = jax.random.split(key, 5)
        x = jax.random.normal(kx, (B, N, d_model), jnp.float32).astype(dtype)
        # LayerNorm params (PyTorch default init: gamma=1, beta=0).
        gamma = jnp.ones((1, d_model), jnp.float32)
        beta = jnp.zeros((1, d_model), jnp.float32)
        # Small random weights (the module's 'lora' init zeros up_proj ->
        # output == residual; random weights exercise the path non-trivially).
        wd = 0.1 * jax.random.normal(kwd, (d_model, down_size), jnp.float32)
        bd = 0.01 * jax.random.normal(kbd, (1, down_size), jnp.float32)
        wu = 0.1 * jax.random.normal(kwu, (down_size, d_model), jnp.float32)
        bu = 0.01 * jax.random.normal(kbu, (1, d_model), jnp.float32)
        scale = 0.1

        out = adapter_forward(x, gamma, beta, wd, bd, wu, bu, scale=scale)
        out = jax.block_until_ready(out)
        ref = reference_adapter(x, gamma, beta, wd, bd, wu, bu, scale=scale)
        assert out.shape == (B, N, d_model)
        assert jnp.allclose(out.astype(jnp.float32), ref.astype(jnp.float32),
                            atol=atol, rtol=rtol), (
            f"mismatch vs reference (d_model={d_model}, dtype={dtype})")

    key = jax.random.PRNGKey(0)
    k1, k2, k3, k4, k5 = jax.random.split(key, 5)
    run_case(32, 8, 2, 8, k1)     # packed path: 4 tokens per 128-lane row
    run_case(32, 8, 1, 5, k2)     # packed path + ragged packed-row padding
    run_case(256, 16, 2, 8, k3)   # direct path, MXU LN reduce, 2 grid steps
    run_case(32, 8, 4, 25, k4)    # packed path, partial boundary block
    run_case(64, 16, 2, 16, k5, dtype=jnp.bfloat16, atol=2e-2, rtol=2e-2)  # bf16 I/O

    print("KERNEL_OK")
</pallas_src>

<mosaic_0001>
module attributes {stable_mosaic.version = 11 : i64} {
  func.func @_adapter_kernel(%arg0: i32, %arg1: memref<4x128xf32, #tpu.memory_space<vmem>>, %arg2: memref<128x32xf32, #tpu.memory_space<vmem>>, %arg3: memref<1x32xf32, #tpu.memory_space<vmem>>, %arg4: memref<32x128xf32, #tpu.memory_space<vmem>>, %arg5: memref<1x128xf32, #tpu.memory_space<vmem>>, %arg6: memref<128x128xf32, #tpu.memory_space<vmem>>, %arg7: memref<4x128xf32, #tpu.memory_space<vmem>>) attributes {dimension_semantics = [#tpu.dimension_semantics<parallel>], iteration_bounds = array<i64: 1>, scalar_prefetch = 0 : i64, scratch_operands = 0 : i64, tpu.core_type = #tpu.core_type<tc>, window_params = [{transform_indices = @transform_0, window_bounds = array<i64: 4, 128>}, {pipeline_mode = #tpu.pipeline_mode<synchronous>, transform_indices = @transform_1, window_bounds = array<i64: 128, 32>}, {pipeline_mode = #tpu.pipeline_mode<synchronous>, transform_indices = @transform_2, window_bounds = array<i64: 1, 32>}, {pipeline_mode = #tpu.pipeline_mode<synchronous>, transform_indices = @transform_3, window_bounds = array<i64: 32, 128>}, {pipeline_mode = #tpu.pipeline_mode<synchronous>, transform_indices = @transform_4, window_bounds = array<i64: 1, 128>}, {pipeline_mode = #tpu.pipeline_mode<synchronous>, transform_indices = @transform_5, window_bounds = array<i64: 128, 128>}, {transform_indices = @transform_6, window_bounds = array<i64: 4, 128>}]} {
    %c0 = arith.constant 0 : index
    %c0_0 = arith.constant 0 : index
    %0 = vector.load %arg1[%c0, %c0_0] : memref<4x128xf32, #tpu.memory_space<vmem>>, vector<4x128xf32>
    %c0_1 = arith.constant 0 : index
    %c0_2 = arith.constant 0 : index
    %1 = vector.load %arg6[%c0_1, %c0_2] : memref<128x128xf32, #tpu.memory_space<vmem>>, vector<128x128xf32>
    %cst = arith.constant dense<0.000000e+00> : vector<4x128xf32>
    %2 = tpu.matmul %0, %1, %cst {dimension_numbers = #tpu.dot_dimension_numbers<[1], [0], [0], [1], [0, 0, 1, 1], [], []>} : vector<4x128xf32>, vector<128x128xf32>, vector<4x128xf32> -> vector<4x128xf32>
    %3 = arith.subf %0, %2 : vector<4x128xf32>
    %4 = arith.mulf %3, %3 : vector<4x128xf32>
    %cst_3 = arith.constant dense<0.000000e+00> : vector<4x128xf32>
    %5 = tpu.matmul %4, %1, %cst_3 {dimension_numbers = #tpu.dot_dimension_numbers<[1], [0], [0], [1], [0, 0, 1, 1], [], []>} : vector<4x128xf32>, vector<128x128xf32>, vector<4x128xf32> -> vector<4x128xf32>
    %cst_4 = arith.constant 9.99999974E-6 : f32
    %6 = vector.broadcast %cst_4 : f32 to vector<4x128xf32>
    %7 = arith.addf %5, %6 : vector<4x128xf32>
    %8 = math.rsqrt %7 : vector<4x128xf32>
    %9 = arith.mulf %3, %8 : vector<4x128xf32>
    %c0_5 = arith.constant 0 : index
    %c0_6 = arith.constant 0 : index
    %10 = vector.load %arg2[%c0_5, %c0_6] : memref<128x32xf32, #tpu.memory_space<vmem>>, vector<128x32xf32>
    %cst_7 = arith.constant dense<0.000000e+00> : vector<4x32xf32>
    %11 = tpu.matmul %9, %10, %cst_7 {dimension_numbers = #tpu.dot_dimension_numbers<[1], [0], [0], [1], [0, 0, 1, 1], [], []>} : vector<4x128xf32>, vector<128x32xf32>, vector<4x32xf32> -> vector<4x32xf32>
    %c0_8 = arith.constant 0 : index
    %c0_9 = arith.constant 0 : index
    %12 = vector.load %arg3[%c0_8, %c0_9] : memref<1x32xf32, #tpu.memory_space<vmem>>, vector<1x32xf32>
    %13 = vector.broadcast %12 : vector<1x32xf32> to vector<4x32xf32>
    %14 = arith.addf %11, %13 : vector<4x32xf32>
    %cst_10 = arith.constant 0.000000e+00 : f32
    %15 = vector.broadcast %cst_10 : f32 to vector<4x32xf32>
    %16 = arith.maximumf %14, %15 : vector<4x32xf32>
    %c0_11 = arith.constant 0 : index
    %c0_12 = arith.constant 0 : index
    %17 = vector.load %arg4[%c0_11, %c0_12] : memref<32x128xf32, #tpu.memory_space<vmem>>, vector<32x128xf32>
    %cst_13 = arith.constant dense<0.000000e+00> : vector<4x128xf32>
    %18 = tpu.matmul %16, %17, %cst_13 {dimension_numbers = #tpu.dot_dimension_numbers<[1], [0], [0], [1], [0, 0, 1, 1], [], []>} : vector<4x32xf32>, vector<32x128xf32>, vector<4x128xf32> -> vector<4x128xf32>
    %c0_14 = arith.constant 0 : index
    %c0_15 = arith.constant 0 : index
    %19 = vector.load %arg5[%c0_14, %c0_15] : memref<1x128xf32, #tpu.memory_space<vmem>>, vector<1x128xf32>
    %20 = vector.broadcast %19 : vector<1x128xf32> to vector<4x128xf32>
    %21 = arith.addf %18, %20 : vector<4x128xf32>
    %22 = arith.addf %21, %0 : vector<4x128xf32>
    %c0_16 = arith.constant 0 : index
    %c0_17 = arith.constant 0 : index
    %23 = vector.load %arg7[%c0_16, %c0_17] : memref<4x128xf32, #tpu.memory_space<vmem>>, vector<4x128xf32>
    tpu.vector_store %arg7[%c0_16, %c0_17], %22 {strides = array<i32>} : memref<4x128xf32, #tpu.memory_space<vmem>>, vector<4x128xf32>,
    return
  }
  func.func @transform_0(%arg0: i32) -> (i32, i32) {
    %c0_i32 = arith.constant 0 : i32
    %c0_i32_0 = arith.constant 0 : i32
    return %arg0, %c0_i32 : i32, i32
  }
  func.func @transform_1(%arg0: i32) -> (i32, i32) {
    %c0_i32 = arith.constant 0 : i32
    %c0_i32_0 = arith.constant 0 : i32
    %c0_i32_1 = arith.constant 0 : i32
    return %c0_i32, %c0_i32_0 : i32, i32
  }
  func.func @transform_2(%arg0: i32) -> (i32, i32) {
    %c0_i32 = arith.constant 0 : i32
    %c0_i32_0 = arith.constant 0 : i32
    %c0_i32_1 = arith.constant 0 : i32
    return %c0_i32, %c0_i32_0 : i32, i32
  }
  func.func @transform_3(%arg0: i32) -> (i32, i32) {
    %c0_i32 = arith.constant 0 : i32
    %c0_i32_0 = arith.constant 0 : i32
    %c0_i32_1 = arith.constant 0 : i32
    return %c0_i32, %c0_i32_0 : i32, i32
  }
  func.func @transform_4(%arg0: i32) -> (i32, i32) {
    %c0_i32 = arith.constant 0 : i32
    %c0_i32_0 = arith.constant 0 : i32
    %c0_i32_1 = arith.constant 0 : i32
    return %c0_i32, %c0_i32_0 : i32, i32
  }
  func.func @transform_5(%arg0: i32) -> (i32, i32) {
    %c0_i32 = arith.constant 0 : i32
    %c0_i32_0 = arith.constant 0 : i32
    %c0_i32_1 = arith.constant 0 : i32
    return %c0_i32, %c0_i32_0 : i32, i32
  }
  func.func @transform_6(%arg0: i32) -> (i32, i32) {
    %c0_i32 = arith.constant 0 : i32
    %c0_i32_0 = arith.constant 0 : i32
    return %arg0, %c0_i32 : i32, i32
  }
}

</mosaic_0001>

<bundles_post_ra>
// kernel: tpu_custom_call.1
= control target key start
LH: loop header
LB: loop body
LE: loop exit
PB: predicated region body
PF: predicated region fallthrough
CT: control target
= control target key end

     0   :  { %v663_v3 = vmov 0.0|0.0   ;;  %vm664_vm0 = vmmov 0   ;;  %v665_v6 = vmov 0.0   ;;  %s870_s0 = inlined_call_operand.vmem [shape: f32[4,128], index: 0, kind: input, shape index: {}]   ;;  %s871_s1 = inlined_call_operand.vmem [shape: f32[128,32], index: 1, kind: input, shape index: {}]   ;;  %s872_s2 = inlined_call_operand.vmem [shape: f32[1,32], index: 2, kind: input, shape index: {}]   ;;  %s873_s3 = inlined_call_operand.vmem [shape: f32[32,128], index: 3, kind: input, shape index: {}]   ;;  %s874_s4 = inlined_call_operand.vmem [shape: f32[1,128], index: 4, kind: input, shape index: {}]   ;;  %s875_s5 = inlined_call_operand.vmem [shape: f32[128,128], index: 5, kind: input, shape index: {}]   ;;  %s876_s6 = inlined_call_operand.hbm [shape: f32[4,128], index: 6, kind: output, shape index: {}]  }
   0x1   :  { %v25_v0 = vld [vmem:[%s875_s5] sm:$0xff]  ;;  %v26_v1 = vld [vmem:[%s875_s5 + $0x8] sm:$0xff]  ;;  %v27_v2 = vld [vmem:[%s875_s5 + $0x10] sm:$0xff]  ;;  %555 = vmatprep.subr.bf16.mxu0 %v663_v3  ;;  %471 = vmatprep.mubr.msk.f32.mxu0 %vm664_vm0, %v665_v6 }
   0x2   :  { %v556_v4 = vpack.c.bf16 %v26_v1, %v25_v0  ;;  %v28_v5 = vld [vmem:[%s875_s5 + $0x18] sm:$0xff]  ;;  %579 = vmatprep.subr.bf16.mxu1 %v663_v3  ;;  %506 = vmatprep.mubr.msk.f32.mxu1 %vm664_vm0, %v665_v6  ;;  %v29_v8 = vld [vmem:[%s875_s5 + $0x20] sm:$0xff]  ;;  %v30_v9 = vld [vmem:[%s875_s5 + $0x28] sm:$0xff] }
   0x3   :  { %v559_v7 = vpack.c.bf16 %v28_v5, %v27_v2 }
   0x4   :  { %557 = vmatpush3.bf16.msra.mxu0 %v556_v4  ;;  %581 = vmatpush3.bf16.msra.mxu1 %v556_v4 }
   0x5   :  { %558 = vmatprep.subr.bf16.mxu0 %v663_v3  ;;  %582 = vmatprep.subr.bf16.mxu1 %v663_v3 }
   0x6   :  { %11 = vsyncpa [#allocation3], 0  ;;  %v562_v10 = vpack.c.bf16 %v30_v9, %v29_v8  ;;  %v31_v11 = vld [vmem:[%s875_s5 + $0x30] sm:$0xff]  ;;  %v32_v12 = vld [vmem:[%s875_s5 + $0x38] sm:$0xff]  ;;  %vm290_vm1 = vcmask 261120   ;;  %s666_s22 = smov [#allocation2]  }
   0x7   :  { %v565_v13 = vpack.c.bf16 %v32_v12, %v31_v11  ;;  %v33_v14 = vld [vmem:[%s875_s5 + $0x40] sm:$0xff]  ;;  %v34_v15 = vld [vmem:[%s875_s5 + $0x48] sm:$0xff]  ;;  %v35_v17 = vld [vmem:[%s875_s5 + $0x50] sm:$0xff]  ;;  %s372_s23 = sshll.u32 %s666_s22, 4  ;;  %s373_s23 = int_to_ptr.vmem [resolvable:$true] %s372_s23 }
   0x8   :  { %560 = vmatpush3.bf16.msra.mxu0 %v559_v7  ;;  %584 = vmatpush3.bf16.msra.mxu1 %v559_v7  ;;  %v568_v16 = vpack.c.bf16 %v34_v15, %v33_v14  ;;  %v36_v18 = vld [vmem:[%s875_s5 + $0x58] sm:$0xff]  ;;  %v37_v20 = vld [vmem:[%s875_s5 + $0x60] sm:$0xff]  ;;  %v38_v21 = vld [vmem:[%s875_s5 + $0x68] sm:$0xff]  ;;  %p644_p1 = scmp.lt.s32.totalorder %s373_s23, %s373_s23 }
   0x9   :  { %561 = vmatprep.subr.bf16.mxu0 %v663_v3  ;;  %585 = vmatprep.subr.bf16.mxu1 %v663_v3  ;;  %v571_v19 = vpack.c.bf16 %v36_v18, %v35_v17  ;;  %v574_v22 = vpack.c.bf16 %v38_v21, %v37_v20  ;;  %v39_v23 = vld [vmem:[%s875_s5 + $0x70] sm:$0xff]  ;;  %v40_v24 = vld [vmem:[%s875_s5 + $0x78] sm:$0xff]  ;;  %v773_v26 = vld [vmem:[%s870_s0] sm:$0xf] }
   0xa   :  { %v577_v25 = vpack.c.bf16 %v40_v24, %v39_v23  ;;  %v185_v27 = vld [vmem:[%s871_s1] sm:$0xff]  ;;  %v186_v28 = vld [vmem:[%s871_s1 + $0x8] sm:$0xff]  ;;  %v187_v29 = vld [vmem:[%s871_s1 + $0x10] sm:$0xff] }
   0xb   :  { %v604_v30 = vpack.c.bf16 %v186_v28, %v185_v27  ;;  %v188_v31 = vld [vmem:[%s871_s1 + $0x18] sm:$0xff]  ;;  %v189_v33 = vld [vmem:[%s871_s1 + $0x20] sm:$0xff]  ;;  %v190_v34 = vld [vmem:[%s871_s1 + $0x28] sm:$0xff] }
   0xc   :  { %563 = vmatpush3.bf16.msra.mxu0 %v562_v10  ;;  %587 = vmatpush3.bf16.msra.mxu1 %v562_v10  ;;  %v607_v32 = vpack.c.bf16 %v188_v31, %v187_v29  ;;  %v610_v35 = vpack.c.bf16 %v190_v34, %v189_v33  ;;  %v191_v36 = vld [vmem:[%s871_s1 + $0x30] sm:$0xff]  ;;  %v192_v37 = vld [vmem:[%s871_s1 + $0x38] sm:$0xff]  ;;  %v193_v43 = vld [vmem:[%s871_s1 + $0x40] sm:$0xff] }
   0xd   :  { %564 = vmatprep.subr.bf16.mxu0 %v663_v3  ;;  %588 = vmatprep.subr.bf16.mxu1 %v663_v3  ;;  %v613_v38 = vpack.c.bf16 %v192_v37, %v191_v36  ;;  %v194_v44 = vld [vmem:[%s871_s1 + $0x48] sm:$0xff]  ;;  %v195_v46 = vld [vmem:[%s871_s1 + $0x50] sm:$0xff]  ;;  %v196_v47 = vld [vmem:[%s871_s1 + $0x58] sm:$0xff] }
   0xe   :  { %v616_v45 = vpack.c.bf16 %v194_v44, %v193_v43  ;;  %v619_v48 = vpack.c.bf16 %v196_v47, %v195_v46  ;;  %v197_v49 = vld [vmem:[%s871_s1 + $0x60] sm:$0xff]  ;;  %v198_v50 = vld [vmem:[%s871_s1 + $0x68] sm:$0xff]  ;;  %v199_v52 = vld [vmem:[%s871_s1 + $0x70] sm:$0xff] }
   0xf   :  { %v622_v51 = vpack.c.bf16 %v198_v50, %v197_v49  ;;  %v200_v53 = vld [vmem:[%s871_s1 + $0x78] sm:$0xff]  ;;  %v279_v55 = vld [vmem:[%s873_s3] sm:$0xff]  ;;  %v280_v56 = vld [vmem:[%s873_s3 + $0x8] sm:$0xff] }
  0x10   :  { %566 = vmatpush3.bf16.msra.mxu0 %v565_v13  ;;  %590 = vmatpush3.bf16.msra.mxu1 %v565_v13  ;;  %v625_v54 = vpack.c.bf16 %v200_v53, %v199_v52  ;;  %v628_v57 = vpack.c.bf16 %v280_v56, %v279_v55  ;;  %v281_v63 = vld [vmem:[%s873_s3 + $0x10] sm:$0xff]  ;;  %v282_v0 = vld [vmem:[%s873_s3 + $0x18] sm:$0xff]  ;;  %v380_v2 = vld [vmem:[%s872_s2] ss:$0 sm:$0xff]  ;;  %s639_s2 = scalar_lea.vmem %s373_s23, 64 }
  0x11   :  { %567 = vmatprep.subr.bf16.mxu0 %v663_v3  ;;  %591 = vmatprep.subr.bf16.mxu1 %v663_v3  ;;  %v631_v1 = vpack.c.bf16 %v282_v0, %v281_v63  ;;  %v381_v7 = vld [vmem:[%s874_s4] ss:$0 sm:$0xff]  ;;  %p640_p0 = scmp.ne.s32.totalorder %s373_s23, %s639_s2  ;;  %p645_p2 = scmp.lt.s32.totalorder %s639_s2, %s639_s2 }
  0x13   :  { %p646_p3 = por %p645_p2, %p644_p1 }
  0x14   :  { %569 = vmatpush3.bf16.msra.mxu0 %v568_v16  ;;  %593 = vmatpush3.bf16.msra.mxu1 %v568_v16 }
  0x15   :  { %570 = vmatprep.subr.bf16.mxu0 %v663_v3  ;;  %594 = vmatprep.subr.bf16.mxu1 %v663_v3  ;;  %p647_p4 = pnand %p646_p3, %p640_p0 }
  0x18   :  { %572 = vmatpush3.bf16.msra.mxu0 %v571_v19  ;;  %596 = vmatpush3.bf16.msra.mxu1 %v571_v19 }
  0x19   :  { %573 = vmatprep.subr.bf16.mxu0 %v663_v3  ;;  %597 = vmatprep.subr.bf16.mxu1 %v663_v3 }
  0x1c   :  { %575 = vmatpush3.bf16.msra.mxu0 %v574_v22  ;;  %599 = vmatpush3.bf16.msra.mxu1 %v574_v22 }
  0x1d   :  { %576 = vmatprep.subr.bf16.mxu0 %v663_v3  ;;  %600 = vmatprep.subr.bf16.mxu1 %v663_v3 }
  0x20   :  { %578 = vmatpush3.bf16.msra.mxu0 %v577_v25  ;;  %602 = vmatpush3.bf16.msra.mxu1 %v577_v25 }
  0x21   :  { %603 = vmatprep.subr.bf16.mxu0 %v663_v3  ;;  %627 = vmatprep.subr.bf16.mxu1 %v663_v3 }
  0x23   :  { %472 = vmatmul.mubr.f32.vlgmr.msra.gmra.mrb[0].mxu0 %v773_v26 }
  0x24   :  { %541 = vmatprep.mubr.msk.f32.mxu0 %vm664_vm0, %v665_v6  ;;  %605 = vmatpush3.bf16.msra.mxu0 %v604_v30 }
  0x25   :  { %606 = vmatprep.subr.bf16.mxu0 %v663_v3 }
  0x28   :  { %608 = vmatpush3.bf16.msra.mxu0 %v607_v32 }
  0x29   :  { %609 = vmatprep.subr.bf16.mxu0 %v663_v3 }
  0x2c   :  { %611 = vmatpush3.bf16.msra.mxu0 %v610_v35 }
  0x2d   :  { %612 = vmatprep.subr.bf16.mxu0 %v663_v3 }
  0x30   :  { %614 = vmatpush3.bf16.msra.mxu0 %v613_v38 }
  0x31   :  { %615 = vmatprep.subr.bf16.mxu0 %v663_v3 }
  0x34   :  { %617 = vmatpush3.bf16.msra.mxu0 %v616_v45 }
  0x35   :  { %618 = vmatprep.subr.bf16.mxu0 %v663_v3 }
  0x38   :  { %620 = vmatpush3.bf16.msra.mxu0 %v619_v48 }
  0x39   :  { %621 = vmatprep.subr.bf16.mxu0 %v663_v3 }
  0x3c   :  { %623 = vmatpush3.bf16.msra.mxu0 %v622_v51 }
  0x3d   :  { %624 = vmatprep.subr.bf16.mxu0 %v663_v3 }
  0x40   :  { %626 = vmatpush3.bf16.msra.mxu0 %v625_v54 }
  0xf6   :  { %v107_v39 = vpop.f32.mrb[0].mxu0 }
  0xf7   :  { %v111_v40 = vsub.f32 %v773_v26, %v107_v39  ;;  %v473_v41 = vpop.f32.mrb[1].mxu0 }
  0xf9   :  { %v112_v42 = vmul.f32 %v111_v40, %v111_v40 }
  0xfb   :  { %507 = vmatmul.mubr.f32.vlgmr.msra.gmra.mrb[0].mxu1 %v112_v42 }
  0xfc   :  { %552 = vmatprep.mubr.msk.f32.mxu1 %vm664_vm0, %v665_v6  ;;  %629 = vmatpush3.bf16.msra.mxu1 %v628_v57 }
  0xfd   :  { %630 = vmatprep.subr.bf16.mxu1 %v663_v3 }
 0x100   :  { %632 = vmatpush3.bf16.msra.mxu1 %v631_v1 }
 0x1ce   :  { %v179_v58 = vpop.f32.mrb[0].mxu1 }
 0x1cf   :  { %v180_v59 = vadd.f32 1e-05, %v179_v58  ;;  %v508_v60 = vpop.f32.mrb[1].mxu1 }
 0x1d1   :  { %637 = vrsqrt.f32 %v180_v59 }
 0x1db   :  { %v638_v61 = vpop.eup %637 }
 0x1dc   :  { %v184_v62 = vmul.f32 %v638_v61, %v111_v40 }
 0x1de   :  { %542 = vmatmul.mubr.f32.vlgmr.msra.gmra.mrb[2].mxu0 %v184_v62 }
 0x2b1   :  { %v274_v3 = vpop.f32.mrb[2].mxu0 }
 0x2b2   :  { %v275_v4 = vadd.f32 %v380_v2, %v274_v3  ;;  %v543_v5 = vpop.f32.mrb[3].mxu0 }
 0x2b4   :  { %v278_v6 = vmax.f32 %v275_v4, 0.0 }
 0x2b6   :  { %553 = vmatmul.mubr.msk.f32.vlgmr.msra.gmra.mrb[2].mxu1 %vm290_vm1, %v278_v6 }
 0x389   :  { %v360_v8 = vpop.f32.mrb[2].mxu1 }
 0x38a   :  { %v361_v9 = vadd.f32 %v381_v7, %v360_v8  ;;  %v554_v10 = vpop.f32.mrb[3].mxu1 }
 0x38c   :  { %v364_v11 = vadd.f32 %v361_v9, %v773_v26 }
 0x38e   :  { %365 = vst [vmem:[#allocation2] sm:$0xf] %v364_v11 }
 0x38f   :  { %650 = shalt.err (!%p647_p4)
}
 0x390   :  { %s651_s4 = scalar_lea.hbm %s876_s6, 64 }
 0x391   :  { %p652_p5 = scmp.ne.s32.totalorder %s876_s6, %s651_s4  ;;  %p655_p6 = scmp.lt.u32.totalorder %s651_s4, %s876_s6 }
 0x393   :  { %p657_p7 = pnand %p655_p6, %p652_p5 }
 0x395   :  { %660 = shalt.err (!%p657_p7)
}
 0x396   :  { %375 = dma.vmem_to_hbm [thread:$0]  %s373_s23, 64, %s876_s6, [#allocation3]  }
 0x397   :  { %661 = dma.done.wait [#allocation3], 64  }
 0x398   :  { %662 = vsyncadd [#allocation3], 4294967232 }
 0x399   :  { %379 = vsyncpa [#allocation3], 1 }

</bundles_post_ra>
